<compile_context>
chip_gen: v7x
topology: tpu7x:2x2x1
jax: 0.10.0
libtpu: 0.0.40
codegen_flags: <defaults>
</compile_context>

<pallas_src>
import functools

import jax
import jax.numpy as jnp
from jax.experimental import pallas as pl
from jax.experimental.pallas import tpu as pltpu

# keep the in-kernel f32 MXU matmuls and the pure-JAX reference numerically aligned
jax.config.update("jax_default_matmul_precision", "highest")

_VMEM_SPEC = pl.BlockSpec(memory_space=pltpu.MemorySpace.VMEM)
_PARALLEL = lambda n: pltpu.CompilerParams(
    dimension_semantics=("parallel",) * n)


# ---------------------------------------------------------------------------
# In-kernel helpers
# ---------------------------------------------------------------------------
def _layer_norm(x, gamma, beta):
    mu = jnp.mean(x, axis=-1, keepdims=True)
    var = jnp.mean((x - mu) ** 2, axis=-1, keepdims=True)
    return (x - mu) * jax.lax.rsqrt(var + 1e-5) * gamma + beta


def _gated_residual(x, res, wg, dim):
    # sigmoid(cat(x, res, x - res) @ wg) decomposed so no lane concat is needed
    gl = (jnp.dot(x, wg[:dim] + wg[2 * dim:], preferred_element_type=jnp.float32)
          + jnp.dot(res, wg[dim:2 * dim] - wg[2 * dim:],
                    preferred_element_type=jnp.float32))
    gate = jax.nn.sigmoid(gl)
    return x * gate + res * (1.0 - gate)


# ---------------------------------------------------------------------------
# Pallas kernels
# ---------------------------------------------------------------------------
def _linear_kernel(x_ref, w_ref, b_ref, o_ref, *, relu):
    y = jnp.dot(x_ref[...], w_ref[...], preferred_element_type=jnp.float32)
    y = y + b_ref[...]
    if relu:
        y = jnp.maximum(y, 0.0)
    o_ref[...] = y


def _masked_linear_kernel(x_ref, m_ref, w_ref, b_ref, o_ref):
    # edge feature encoder: non-edges must stay exactly 0 (to_dense_adj semantics)
    y = jnp.dot(x_ref[...], w_ref[...], preferred_element_type=jnp.float32)
    o_ref[...] = (y + b_ref[...]) * m_ref[...]


def _qkv_rope_kernel(nodes_ref, g_ref, bta_ref, wq_ref, bq_ref, wkv_ref,
                     bkv_ref, cos_ref, sin_ref, prot_ref,
                     q_ref, k_ref, v_ref):
    """PreNorm LayerNorm + Q/K/V projections + rotary embedding (one graph)."""
    hd = wq_ref.shape[1]
    ln = _layer_norm(nodes_ref[0], g_ref[...], bta_ref[...])
    q = jnp.dot(ln, wq_ref[...], preferred_element_type=jnp.float32) + bq_ref[...]
    kv = jnp.dot(ln, wkv_ref[...], preferred_element_type=jnp.float32) + bkv_ref[...]
    k = kv[:, :hd]
    v = kv[:, hd:]
    cos, sin, prot = cos_ref[...], sin_ref[...], prot_ref[...]
    # interleaved-pair rotation done as one MXU matmul against a +/-1
    # pair-swap permutation matrix (no lane shuffles).
    q_ref[0] = q * cos + jnp.dot(q, prot, preferred_element_type=jnp.float32) * sin
    k_ref[0] = k * cos + jnp.dot(k, prot, preferred_element_type=jnp.float32) * sin
    v_ref[0] = v


def _attn_layer_kernel(res_ref, q_ref, k_ref, v_ref, e_ref, mask_ref,
                       wekv_ref, bekv_ref, hsum_ref, hexp_ref,
                       wo_ref, bo_ref, wg_ref, out_ref):
    """Edge-conditioned multi-head attention + out-proj + gated residual for
    one (batch, target-node tile) grid cell.  All heads are batched."""
    tq, hd = q_ref.shape[1], q_ref.shape[2]
    n = k_ref.shape[1]
    heads = hsum_ref.shape[1]
    dim = res_ref.shape[2]
    e_in = e_ref.shape[3]
    scale = float(hd // heads) ** -0.5

    q = q_ref[0]                                                    # (TQ, HD)
    k = k_ref[0]                                                    # (N,  HD)
    v = v_ref[0]                                                    # (N,  HD)
    res = res_ref[0]                                                # (TQ, dim)

    # project the streamed edge tile for all (target, source) pairs: one MXU
    # matmul; the (TQ*N, HD) projection is never materialized in HBM.
    e = jnp.dot(e_ref[0].reshape(tq * n, e_in), wekv_ref[...],
                preferred_element_type=jnp.float32) + bekv_ref[...]  # (TQ*N, HD)

    # pair-major broadcasts: q over sources, k/v over targets
    qx = jnp.broadcast_to(q[:, None, :], (tq, n, hd)).reshape(tq * n, hd)
    kx = jnp.broadcast_to(k[None, :, :], (tq, n, hd)).reshape(tq * n, hd)
    vx = jnp.broadcast_to(v[None, :, :], (tq, n, hd)).reshape(tq * n, hd)

    # head-batched logits: one VPU multiply + one MXU matmul against the
    # block-diagonal head-sum matrix (HD, H).
    logits = jnp.dot(qx * (kx + e), hsum_ref[...],
                     preferred_element_type=jnp.float32) * scale     # (TQ*N, H)

    # mask padded source nodes
    msk = jnp.broadcast_to(mask_ref[0][None, :, :], (tq, n, 1)).reshape(tq * n, 1)
    logits = jnp.where(msk > 0.0, logits, jnp.float32(-1e30))
    logits = logits.reshape(tq, n, heads)

    # softmax over sources; denominator via EUP approx reciprocal + 1 Newton step
    m = jnp.max(logits, axis=1, keepdims=True)
    p = jnp.exp(logits - m)
    denom = jnp.sum(p, axis=1, keepdims=True)
    inv = pl.reciprocal(denom, approx=True)
    inv = inv * (2.0 - denom * inv)
    alpha = p * inv                                                  # (TQ, N, H)

    # head-batched aggregation of (v + e): expand per-head alpha to HD lanes
    # with one MXU matmul, multiply, segment-sum over sources.
    alpha_x = jnp.dot(alpha.reshape(tq * n, heads), hexp_ref[...],
                      preferred_element_type=jnp.float32)            # (TQ*N, HD)
    agg = jnp.sum((alpha_x * (vx + e)).reshape(tq, n, hd), axis=1)    # (TQ, HD)

    # fused epilogue: output projection + gated residual, one lane-dense store
    x = jnp.dot(agg, wo_ref[...], preferred_element_type=jnp.float32) + bo_ref[...]
    out_ref[0] = _gated_residual(x, res, wg_ref[...], dim)


def _ff_layer_kernel(x_ref, g_ref, bta_ref, w1_ref, b1_ref, w2_ref, b2_ref,
                     wg_ref, o_ref):
    """PreNorm feed-forward (GELU) + gated residual for a tile of nodes."""
    dim = x_ref.shape[1]
    x = x_ref[...]
    ln = _layer_norm(x, g_ref[...], bta_ref[...])
    h = jnp.dot(ln, w1_ref[...], preferred_element_type=jnp.float32) + b1_ref[...]
    # TODO(synk): torch nn.GELU uses the exact erf form; tanh approximation used here.
    h = jax.nn.gelu(h, approximate=True)
    y = jnp.dot(h, w2_ref[...], preferred_element_type=jnp.float32) + b2_ref[...]
    o_ref[...] = _gated_residual(y, x, wg_ref[...], dim)


def _pool_head_kernel(x_ref, mask_ref, w1_ref, b1_ref, w2_ref, b2_ref,
                      w3_ref, b3_ref, o_ref):
    """Masked mean pooling over nodes + 3-layer prediction head (fused)."""
    x = x_ref[...]                       # (B, N, dim)
    m = mask_ref[...]                    # (B, N, 1)
    cnt = jnp.sum(m, axis=1)             # (B, 1)
    pooled = jnp.sum(x * m, axis=1) / jnp.maximum(cnt, 1.0)
    h = jnp.maximum(jnp.dot(pooled, w1_ref[...],
                            preferred_element_type=jnp.float32) + b1_ref[...], 0.0)
    # TODO(synk): nn.Dropout(p=0.5) is identity in eval mode; training-mode
    # stochastic dropout is not implemented.
    h = jnp.maximum(jnp.dot(h, w2_ref[...],
                            preferred_element_type=jnp.float32) + b2_ref[...], 0.0)
    o_ref[...] = jnp.dot(h, w3_ref[...],
                         preferred_element_type=jnp.float32) + b3_ref[...]


# ---------------------------------------------------------------------------
# pallas_call wrappers
# ---------------------------------------------------------------------------
def _pad_rows(x, tr):
    r = x.shape[0]
    rp = ((r + tr - 1) // tr) * tr
    if rp != r:
        x = jnp.pad(x, ((0, rp - r),) + ((0, 0),) * (x.ndim - 1))
    return x, r


def linear_rows(x, w, b, relu=False, tr=8):
    """Row-tiled y = x @ w + b (optionally ReLU)."""
    xp, r = _pad_rows(x, tr)
    k, n = w.shape
    out = pl.pallas_call(
        functools.partial(_linear_kernel, relu=relu),
        out_shape=jax.ShapeDtypeStruct((xp.shape[0], n), jnp.float32),
        grid=(xp.shape[0] // tr,),
        in_specs=[pl.BlockSpec((tr, k), lambda i: (i, 0)),
                  pl.BlockSpec((k, n), lambda i: (0, 0)),
                  pl.BlockSpec((1, n), lambda i: (0, 0))],
        out_specs=pl.BlockSpec((tr, n), lambda i: (i, 0)),
        compiler_params=_PARALLEL(1),
    )(xp, w, b)
    return out[:r]


def masked_linear_rows(x, m, w, b, tr=128):
    """Row-tiled y = (x @ w + b) * m  (dense edge feature encoder)."""
    xp, r = _pad_rows(x, tr)
    mp, _ = _pad_rows(m, tr)
    k, n = w.shape
    out = pl.pallas_call(
        _masked_linear_kernel,
        out_shape=jax.ShapeDtypeStruct((xp.shape[0], n), jnp.float32),
        grid=(xp.shape[0] // tr,),
        in_specs=[pl.BlockSpec((tr, k), lambda i: (i, 0)),
                  pl.BlockSpec((tr, 1), lambda i: (i, 0)),
                  pl.BlockSpec((k, n), lambda i: (0, 0)),
                  pl.BlockSpec((1, n), lambda i: (0, 0))],
        out_specs=pl.BlockSpec((tr, n), lambda i: (i, 0)),
        compiler_params=_PARALLEL(1),
    )(xp, mp, w, b)
    return out[:r]


def qkv_rope(nodes, p, consts):
    B, N, dim = nodes.shape
    hd = p["wq"].shape[1]
    c3 = lambda: pl.BlockSpec((1, N, hd), lambda b: (b, 0, 0))
    w2 = lambda s: pl.BlockSpec(s, lambda b: (0, 0))
    return pl.pallas_call(
        _qkv_rope_kernel,
        out_shape=(jax.ShapeDtypeStruct((B, N, hd), jnp.float32),) * 3,
        grid=(B,),
        in_specs=[pl.BlockSpec((1, N, dim), lambda b: (b, 0, 0)),
                  w2((1, dim)), w2((1, dim)),
                  w2((dim, hd)), w2((1, hd)),
                  w2((dim, 2 * hd)), w2((1, 2 * hd)),
                  w2((N, hd)), w2((N, hd)), w2((hd, hd))],
        out_specs=(c3(), c3(), c3()),
        compiler_params=_PARALLEL(1),
    )(nodes, p["ln_g"], p["ln_b"], p["wq"], p["bq"], p["wkv"], p["bkv"],
      consts["cos"], consts["sin"], consts["prot"])


def attn_layer(nodes, q, k, v, edges, mask_col, p, consts, tq):
    B, N, dim = nodes.shape
    hd = q.shape[-1]
    e_in = edges.shape[-1]
    heads = consts["hsum"].shape[1]
    assert N % tq == 0
    w2 = lambda s: pl.BlockSpec(s, lambda b, i: (0, 0))
    return pl.pallas_call(
        _attn_layer_kernel,
        out_shape=jax.ShapeDtypeStruct((B, N, dim), jnp.float32),
        grid=(B, N // tq),
        in_specs=[pl.BlockSpec((1, tq, dim), lambda b, i: (b, i, 0)),      # residual
                  pl.BlockSpec((1, tq, hd), lambda b, i: (b, i, 0)),       # q tile
                  pl.BlockSpec((1, N, hd), lambda b, i: (b, 0, 0)),        # k (all)
                  pl.BlockSpec((1, N, hd), lambda b, i: (b, 0, 0)),        # v (all)
                  pl.BlockSpec((1, tq, N, e_in), lambda b, i: (b, i, 0, 0)),  # edges
                  pl.BlockSpec((1, N, 1), lambda b, i: (b, 0, 0)),         # src mask
                  w2((e_in, hd)), w2((1, hd)),
                  w2((hd, heads)), w2((heads, hd)),
                  w2((hd, dim)), w2((1, dim)),
                  w2((3 * dim, 1))],
        out_specs=pl.BlockSpec((1, tq, dim), lambda b, i: (b, i, 0)),
        compiler_params=_PARALLEL(2),
    )(nodes, q, k, v, edges, mask_col, p["wekv"], p["bekv"],
      consts["hsum"], consts["hexp"], p["wo"], p["bo"], p["wg"])


def ff_layer(nodes, p, tr=8):
    B, N, dim = nodes.shape
    hidden = p["w1"].shape[1]
    xp, r = _pad_rows(nodes.reshape(B * N, dim), tr)
    w2 = lambda s: pl.BlockSpec(s, lambda i: (0, 0))
    out = pl.pallas_call(
        _ff_layer_kernel,
        out_shape=jax.ShapeDtypeStruct((xp.shape[0], dim), jnp.float32),
        grid=(xp.shape[0] // tr,),
        in_specs=[pl.BlockSpec((tr, dim), lambda i: (i, 0)),
                  w2((1, dim)), w2((1, dim)),
                  w2((dim, hidden)), w2((1, hidden)),
                  w2((hidden, dim)), w2((1, dim)),
                  w2((3 * dim, 1))],
        out_specs=pl.BlockSpec((tr, dim), lambda i: (i, 0)),
        compiler_params=_PARALLEL(1),
    )(xp, p["ln_g"], p["ln_b"], p["w1"], p["b1"], p["w2"], p["b2"], p["wg"])
    return out[:r].reshape(B, N, dim)


def pool_head(nodes, mask_col, p):
    B = nodes.shape[0]
    nc = p["w3"].shape[1]
    return pl.pallas_call(
        _pool_head_kernel,
        out_shape=jax.ShapeDtypeStruct((B, nc), jnp.float32),
        in_specs=[_VMEM_SPEC] * 8,
        out_specs=_VMEM_SPEC,
    )(nodes, mask_col, p["w1"], p["b1"], p["w2"], p["b2"], p["w3"], p["b3"])


def graph_transformer_forward(params, consts, nodes_raw, edges_raw,
                              edge_present, mask_col, tq):
    B, N, fn = nodes_raw.shape
    fe = edges_raw.shape[-1]
    dim = params["node_enc"]["w"].shape[1]
    edim = params["edge_enc"]["w"].shape[1]

    # feature encoders
    nodes = linear_rows(nodes_raw.reshape(B * N, fn),
                        params["node_enc"]["w"],
                        params["node_enc"]["b"]).reshape(B, N, dim)
    edges = masked_linear_rows(edges_raw.reshape(B * N * N, fe),
                               edge_present.reshape(B * N * N, 1),
                               params["edge_enc"]["w"],
                               params["edge_enc"]["b"]).reshape(B, N, N, edim)

    for layer in params["layers"]:
        q, k, v = qkv_rope(nodes, layer["attn"], consts)
        nodes = attn_layer(nodes, q, k, v, edges, mask_col, layer["attn"],
                           consts, tq)
        nodes = ff_layer(nodes, layer["ff"])

    return pool_head(nodes, mask_col, params["head"])


# ---------------------------------------------------------------------------
# Pure-JAX reference (PyTorch-faithful semantics) for a correctness check
# ---------------------------------------------------------------------------
def _rope_ref(t, cos, sin):
    shp = t.shape
    tp = t.reshape(shp[:-1] + (shp[-1] // 2, 2))
    rot = jnp.stack([-tp[..., 1], tp[..., 0]], axis=-1).reshape(shp)
    return t * cos + rot * sin


def _ln_ref(x, g, b):
    mu = x.mean(-1, keepdims=True)
    var = ((x - mu) ** 2).mean(-1, keepdims=True)
    return (x - mu) / jnp.sqrt(var + 1e-5) * g + b


def _gated_residual_ref(x, res, wg):
    gate = jax.nn.sigmoid(jnp.concatenate([x, res, x - res], -1) @ wg)
    return x * gate + res * (1.0 - gate)


def _attn_ref(nodes, edges, mask, p, consts, heads):
    B, N, _ = nodes.shape
    hd = p["wq"].shape[1]
    dh = hd // heads
    ln = _ln_ref(nodes, p["ln_g"], p["ln_b"])
    q = ln @ p["wq"] + p["bq"]
    kv = ln @ p["wkv"] + p["bkv"]
    k, v = kv[..., :hd], kv[..., hd:]
    q = _rope_ref(q, consts["cos"], consts["sin"])
    k = _rope_ref(k, consts["cos"], consts["sin"])
    e = edges @ p["wekv"] + p["bekv"]
    qh = q.reshape(B, N, heads, dh)
    kh = k.reshape(B, N, heads, dh)
    vh = v.reshape(B, N, heads, dh)
    eh = e.reshape(B, N, N, heads, dh)
    sim = (jnp.einsum("bihd,bjhd->bijh", qh, kh)
           + jnp.einsum("bihd,bijhd->bijh", qh, eh)) * (dh ** -0.5)
    pair_mask = mask[:, :, None] & mask[:, None, :]
    sim = jnp.where(pair_mask[..., None], sim, -1e30)
    attn = jax.nn.softmax(sim, axis=2)
    out = (jnp.einsum("bijh,bjhd->bihd", attn, vh)
           + jnp.einsum("bijh,bijhd->bihd", attn, eh)).reshape(B, N, hd)
    out = out @ p["wo"] + p["bo"]
    return _gated_residual_ref(out, nodes, p["wg"])


def _ff_ref(nodes, p):
    ln = _ln_ref(nodes, p["ln_g"], p["ln_b"])
    h = jax.nn.gelu(ln @ p["w1"] + p["b1"], approximate=True)
    y = h @ p["w2"] + p["b2"]
    return _gated_residual_ref(y, nodes, p["wg"])


def _model_ref(params, consts, nodes_raw, edges_raw, edge_present, mask, heads):
    nodes = nodes_raw @ params["node_enc"]["w"] + params["node_enc"]["b"]
    edges = (edges_raw @ params["edge_enc"]["w"]
             + params["edge_enc"]["b"]) * edge_present
    for layer in params["layers"]:
        nodes = _attn_ref(nodes, edges, mask, layer["attn"], consts, heads)
        nodes = _ff_ref(nodes, layer["ff"])
    m = mask[..., None].astype(jnp.float32)
    pooled = (nodes * m).sum(1) / jnp.maximum(m.sum(1), 1.0)
    h = jnp.maximum(pooled @ params["head"]["w1"] + params["head"]["b1"], 0.0)
    h = jnp.maximum(h @ params["head"]["w2"] + params["head"]["b2"], 0.0)
    return h @ params["head"]["w3"] + params["head"]["b3"]


# ---------------------------------------------------------------------------
# Graph -> dense batch glue (to_dense_batch / to_dense_adj equivalents)
# ---------------------------------------------------------------------------
def densify(x, edge_index, edge_attr, batch, num_graphs, nmax):
    n_total = x.shape[0]
    counts = jnp.zeros((num_graphs,), jnp.int32).at[batch].add(1)
    starts = jnp.concatenate([jnp.zeros((1,), jnp.int32),
                              jnp.cumsum(counts)[:-1]])
    pos = jnp.arange(n_total, dtype=jnp.int32) - starts[batch]

    nodes = jnp.zeros((num_graphs, nmax, x.shape[-1]),
                      jnp.float32).at[batch, pos].set(x)
    mask = jnp.zeros((num_graphs, nmax), jnp.bool_).at[batch, pos].set(True)

    src, dst = edge_index[0], edge_index[1]
    g = batch[src]
    edges = jnp.zeros((num_graphs, nmax, nmax, edge_attr.shape[-1]),
                      jnp.float32).at[g, pos[src], pos[dst]].set(edge_attr)
    present = jnp.zeros((num_graphs, nmax, nmax, 1),
                        jnp.float32).at[g, pos[src], pos[dst]].set(1.0)
    return nodes, edges, present, mask


# ---------------------------------------------------------------------------
# Parameter / constant construction
# ---------------------------------------------------------------------------
def _init_linear(key, fin, fout, bias=True):
    kw, kb = jax.random.split(key)
    w = jax.random.normal(kw, (fin, fout), jnp.float32) / jnp.sqrt(float(fin))
    b = 0.02 * jax.random.normal(kb, (1, fout), jnp.float32) if bias else None
    return w, b


def init_params(key, dim, depth, num_classes, n_feat_node, n_feat_edge,
                edge_dim, heads, dim_head):
    hd = heads * dim_head
    keys = jax.random.split(key, 4 + depth)
    wn, bn = _init_linear(keys[0], n_feat_node, dim)
    we, be = _init_linear(keys[1], n_feat_edge, edge_dim)

    layers = []
    for d in range(depth):
        lk = jax.random.split(keys[4 + d], 8)
        wq, bq = _init_linear(lk[0], dim, hd)
        wkv, bkv = _init_linear(lk[1], dim, 2 * hd)
        wekv, bekv = _init_linear(lk[2], edge_dim, hd)
        wo, bo = _init_linear(lk[3], hd, dim)
        wg_a, _ = _init_linear(lk[4], 3 * dim, 1, bias=False)
        w1, b1 = _init_linear(lk[5], dim, 4 * dim)
        w2, b2 = _init_linear(lk[6], 4 * dim, dim)
        wg_f, _ = _init_linear(lk[7], 3 * dim, 1, bias=False)
        layers.append({
            "attn": {"ln_g": jnp.ones((1, dim), jnp.float32),
                     "ln_b": jnp.zeros((1, dim), jnp.float32),
                     "wq": wq, "bq": bq, "wkv": wkv, "bkv": bkv,
                     "wekv": wekv, "bekv": bekv, "wo": wo, "bo": bo,
                     "wg": wg_a},
            "ff": {"ln_g": jnp.ones((1, dim), jnp.float32),
                   "ln_b": jnp.zeros((1, dim), jnp.float32),
                   "w1": w1, "b1": b1, "w2": w2, "b2": b2, "wg": wg_f},
        })

    hk = jax.random.split(keys[2], 3)
    w1, b1 = _init_linear(hk[0], dim, dim)
    w2, b2 = _init_linear(hk[1], dim, dim)
    w3, b3 = _init_linear(hk[2], dim, num_classes)
    return {"node_enc": {"w": wn, "b": bn},
            "edge_enc": {"w": we, "b": be},
            "layers": layers,
            "head": {"w1": w1, "b1": b1, "w2": w2, "b2": b2,
                     "w3": w3, "b3": b3}}


def build_consts(nmax, heads, dim_head):
    hd = heads * dim_head
    inv_freq = 1.0 / (10000.0 ** (jnp.arange(0, dim_head, 2, dtype=jnp.float32)
                                  / dim_head))
    t = jnp.arange(nmax, dtype=jnp.float32)
    freqs = jnp.repeat(t[:, None] * inv_freq[None, :], 2, axis=-1)   # (N, dh)
    freqs = jnp.tile(freqs, (1, heads))                              # (N, HD)

    even = jnp.arange(0, hd, 2)
    prot = jnp.zeros((hd, hd), jnp.float32)
    prot = prot.at[even + 1, even].set(-1.0).at[even, even + 1].set(1.0)

    hsum = jnp.repeat(jnp.eye(heads, dtype=jnp.float32), dim_head, axis=0)
    return {"cos": jnp.cos(freqs), "sin": jnp.sin(freqs),
            "prot": prot, "hsum": hsum, "hexp": hsum.T}


# ---------------------------------------------------------------------------
if __name__ == "__main__":
    key = jax.random.PRNGKey(0)
    k_param, k_x, k_e = jax.random.split(key, 3)

    # GraphTransformerModel config (heads / dim_head are GraphTransformer defaults)
    DIM, DEPTH, NUM_CLASSES = 32, 2, 3
    NUM_FEAT_NODE, NUM_FEAT_EDGE = 6, 4
    EDGE_DIM = DIM                       # edge_dim=None -> dim
    HEADS, DIM_HEAD = 8, 64
    TQ = 8                               # target-node tile for the attention grid

    # small batched graph: two graphs (16 and 12 nodes), one directed ring each
    graph_sizes = [16, 12]
    NMAX = max(graph_sizes)
    n_total = sum(graph_sizes)
    batch_vec = jnp.concatenate(
        [jnp.full((s,), g, jnp.int32) for g, s in enumerate(graph_sizes)])

    srcs, dsts = [], []
    off = 0
    for s in graph_sizes:
        for i in range(s):
            srcs.append(off + i)
            dsts.append(off + (i + 1) % s)
        off += s
    edge_index = jnp.array([srcs, dsts], dtype=jnp.int32)

    x_flat = jax.random.normal(k_x, (n_total, NUM_FEAT_NODE), jnp.float32)
    edge_attr = jax.random.normal(k_e, (edge_index.shape[1], NUM_FEAT_EDGE),
                                  jnp.float32)

    params = init_params(k_param, DIM, DEPTH, NUM_CLASSES, NUM_FEAT_NODE,
                         NUM_FEAT_EDGE, EDGE_DIM, HEADS, DIM_HEAD)
    consts = build_consts(NMAX, HEADS, DIM_HEAD)

    nodes_raw, edges_raw, present, mask = densify(
        x_flat, edge_index, edge_attr, batch_vec, len(graph_sizes), NMAX)
    mask_col = mask.astype(jnp.float32)[..., None]          # (B, N, 1)

    out = graph_transformer_forward(params, consts, nodes_raw, edges_raw,
                                    present, mask_col, TQ)
    out = jax.block_until_ready(out)

    ref = _model_ref(params, consts, nodes_raw, edges_raw, present, mask, HEADS)
    assert out.shape == (len(graph_sizes), NUM_CLASSES)
    assert jnp.allclose(out, ref, atol=5e-3, rtol=5e-3), (out, ref)

    print("KERNEL_OK")
</pallas_src>

<mosaic_0001>
module attributes {stable_mosaic.version = 11 : i64} {
  func.func @_linear_kernel(%arg0: i32, %arg1: memref<8x6xf32, #tpu.memory_space<vmem>>, %arg2: memref<6x32xf32, #tpu.memory_space<vmem>>, %arg3: memref<1x32xf32, #tpu.memory_space<vmem>>, %arg4: memref<8x32xf32, #tpu.memory_space<vmem>>) attributes {dimension_semantics = [#tpu.dimension_semantics<parallel>], iteration_bounds = array<i64: 4>, scalar_prefetch = 0 : i64, scratch_operands = 0 : i64, tpu.core_type = #tpu.core_type<tc>, window_params = [{transform_indices = @transform_0, window_bounds = array<i64: 8, 6>}, {pipeline_mode = #tpu.pipeline_mode<synchronous>, transform_indices = @transform_1, window_bounds = array<i64: 6, 32>}, {pipeline_mode = #tpu.pipeline_mode<synchronous>, transform_indices = @transform_2, window_bounds = array<i64: 1, 32>}, {transform_indices = @transform_3, window_bounds = array<i64: 8, 32>}]} {
    %c0 = arith.constant 0 : index
    %c0_0 = arith.constant 0 : index
    %0 = vector.load %arg1[%c0, %c0_0] : memref<8x6xf32, #tpu.memory_space<vmem>>, vector<8x6xf32>
    %c0_1 = arith.constant 0 : index
    %c0_2 = arith.constant 0 : index
    %1 = vector.load %arg2[%c0_1, %c0_2] : memref<6x32xf32, #tpu.memory_space<vmem>>, vector<6x32xf32>
    %cst = arith.constant dense<0.000000e+00> : vector<8x32xf32>
    %2 = tpu.matmul %0, %1, %cst {dimension_numbers = #tpu.dot_dimension_numbers<[1], [0], [0], [1], [0, 0, 1, 1], [], []>, precision = #tpu.contract_precision<fp32>} : vector<8x6xf32>, vector<6x32xf32>, vector<8x32xf32> -> vector<8x32xf32>
    %c0_3 = arith.constant 0 : index
    %c0_4 = arith.constant 0 : index
    %3 = vector.load %arg3[%c0_3, %c0_4] : memref<1x32xf32, #tpu.memory_space<vmem>>, vector<1x32xf32>
    %4 = vector.broadcast %3 : vector<1x32xf32> to vector<8x32xf32>
    %5 = arith.addf %2, %4 : vector<8x32xf32>
    %c0_5 = arith.constant 0 : index
    %c0_6 = arith.constant 0 : index
    %6 = vector.load %arg4[%c0_5, %c0_6] : memref<8x32xf32, #tpu.memory_space<vmem>>, vector<8x32xf32>
    tpu.vector_store %arg4[%c0_5, %c0_6], %5 {strides = array<i32>} : memref<8x32xf32, #tpu.memory_space<vmem>>, vector<8x32xf32>,
    return
  }
  func.func @transform_0(%arg0: i32) -> (i32, i32) {
    %c0_i32 = arith.constant 0 : i32
    %c0_i32_0 = arith.constant 0 : i32
    return %arg0, %c0_i32 : i32, i32
  }
  func.func @transform_1(%arg0: i32) -> (i32, i32) {
    %c0_i32 = arith.constant 0 : i32
    %c0_i32_0 = arith.constant 0 : i32
    %c0_i32_1 = arith.constant 0 : i32
    return %c0_i32, %c0_i32_0 : i32, i32
  }
  func.func @transform_2(%arg0: i32) -> (i32, i32) {
    %c0_i32 = arith.constant 0 : i32
    %c0_i32_0 = arith.constant 0 : i32
    %c0_i32_1 = arith.constant 0 : i32
    return %c0_i32, %c0_i32_0 : i32, i32
  }
  func.func @transform_3(%arg0: i32) -> (i32, i32) {
    %c0_i32 = arith.constant 0 : i32
    %c0_i32_0 = arith.constant 0 : i32
    return %arg0, %c0_i32 : i32, i32
  }
}

</mosaic_0001>

<bundles_post_ra>
// kernel: tpu_custom_call.1
= control target key start
LH: loop header
LB: loop body
LE: loop exit
PB: predicated region body
PF: predicated region fallthrough
CT: control target
= control target key end

     0   :  { %8 = vsyncpa [#allocation3], 0  ;;  %s1007_s0 = inlined_call_operand.vmem [shape: f32[32,6], index: 0, kind: input, shape index: {}]   ;;  %s1008_s1 = inlined_call_operand.vmem [shape: f32[6,32], index: 1, kind: input, shape index: {}]   ;;  %s1009_s2 = inlined_call_operand.vmem [shape: f32[1,32], index: 2, kind: input, shape index: {}]   ;;  %s1010_s3 = inlined_call_operand.hbm [shape: f32[32,32], index: 3, kind: output, shape index: {}]  }
   0x1   :  { %10 = vsyncpa [#allocation3 + $0x1], 0  ;;  %s895_s12 = smov 0   ;;  %s897_s13 = smov 0  }
   0x2   :  { %s899_s14 = smov 0   ;;  %s901_s15 = smov 0  }
   0x3 LB: > { %s916_s16 = sadd.s32 4294967295, %s870_s15   ;;  %s704_s17 = sadd.s32 4294967294, %s870_s15   ;;  %s870_s15 = sphi %s901_s15, %s1016_s15   ;;  %s866_s14 = sphi %s899_s14, %s1015_s14   ;;  %s862_s13 = sphi %s897_s13, %s1014_s13   ;;  %s858_s12 = sphi %s895_s12, %s1013_s12  }
   0x4   : > { %s920_s18 = sadd.s32 1, %s870_s15   ;;  %s91_s19 = sadd.s32 1, %s866_s14 }
   0x5   : > { %s88_s20 = ssub.s32 %s870_s15, %s920_s18  ;;  %p101_p0 = scmp.ne.s32.totalorder %s866_s14, %s862_s13 }
   0x6   : > { %p89_p1 = scmp.eq.s32.totalorder %s88_s20, 0  ;;  %p102_p2 = scmp.eq.s32.totalorder %s916_s16, 3 }
   0x7   : > { %p107_p3 = scmp.ne.s32.totalorder %s862_s13, %s858_s12  ;;  %p108_p4 = scmp.eq.s32.totalorder %s704_s17, 3 }
   0x8   : > { %s931_s21 = scalar_select %p89_p1, %s866_s14, %s91_s19  }
   0x9   : > { %p933_p5 = por %p102_p2, %p101_p0  ;;  %p937_p6 = por %p108_p4, %p107_p3 }
   0xa   : > { %p707_p7 = scmp.ge.s32.totalorder %s870_s15, 1  ;;  %p139_p8 = scmp.lt.s32.totalorder %s870_s15, 5 }
   0xc   : > { %p140_p9 = pnand %p707_p7, %p139_p8 }
   0xd   : > { %v167_v0 = vld [vmem:[%s1008_s1] sm:$0x3f] (!%p140_p9)  ;;  %vm179_vm0 = vcmask (!%p140_p9), 1045504   ;;  %p162_p10 = scmp.lt.s32.totalorder (!%p140_p9), %s916_s16, 3  ;;  %v872_v1 = vmov (!%p140_p9), 0.0   ;;  %vm873_vm1 = vmmov (!%p140_p9), 0  }
   0xe   : > { %143 = sbr.rel (%p140_p9) target bundleno = 283 (0x11b), region = 32  ;;  %742 = vmatprep.subr.mxu0 (!%p140_p9), %v872_v1  ;;  %v181_v2 = vsel (!%p140_p9), %vm179_vm0, %v167_v0, 0  ;;  %744 = vmatprep.mubr.msk.f32.mxu0 (!%p140_p9), %vm873_vm1, %v872_v1  ;;  %vm175_vm2 = vcmask (!%p140_p9), 48128   ;;  %s159_s4 = sand.u32 (!%p140_p9), 1, %s862_s13   ;;  %v710_v17 = vld [vmem:[%s1009_s2] ss:$0 sm:$0xff] (!%p140_p9) }
   0xf   : > { %v184_v3 = vand.u32 (!%p140_p9), 4294901760, %v181_v2  ;;  %727 = vmatprep.subr.mxu1 (!%p140_p9), %v872_v1  ;;  %729 = vmatprep.mubr.msk.f32.mxu1 (!%p140_p9), %vm873_vm1, %v872_v1  ;;  %s708_s5 = sshll.u32 (!%p140_p9), %s159_s4, 3  ;;  %s712_s8 = sshll.u32 (!%p140_p9), %s916_s16, 7  ;;  %vm629_vm3 = vcmask (!%p140_p9), 261120  }
  0x10   : > { %s161_s9 = scalar_lea.vmem (!%p140_p9), [#allocation2], %s708_s5  ;;  %s965_s19 = scalar_lea.hbm (!%p140_p9), %s1010_s3, %s712_s8 }
  0x11   : > { %v261_v4 = vsub.f32 (!%p140_p9), %v181_v2, %v184_v3  ;;  %743 = vmatpush3.msra.mxu0 (!%p140_p9), %v184_v3  ;;  %728 = vmatpush3.msra.mxu1 (!%p140_p9), %v184_v3  ;;  %s645_s10 = sshll.u32 (!%p140_p9), %s161_s9, 4  ;;  %s632_s20 = scalar_lea.sflag (!%p140_p9), [#allocation3], %s159_s4  ;;  %s967_s10 = int_to_ptr.vmem [resolvable:$true] %s645_s10 }
  0x12   : > { %732 = vmatprep.subr.mxu1 (!%p140_p9), %v872_v1  ;;  %747 = vmatprep.subr.mxu0 (!%p140_p9), %v872_v1  ;;  %s808_s24 = scalar_lea.vmem (!%p140_p9), %s967_s10, 128 }
  0x13   : > { %v262_v7 = vand.u32 (!%p140_p9), 4294901760, %v261_v4  ;;  %p809_p11 = scmp.ne.s32.totalorder (!%p140_p9), %s967_s10, %s808_s24 }
  0x15   : > { %s163_s26 = scalar_select %p162_p10, %s916_s16, 3  ;;  %v263_v10 = vsub.f32 %v261_v4, %v262_v7 }
  0x16   : > { %p810_p12 = pnand %p809_p11, %p933_p5  ;;  %s874_s16 = smov [#allocation2]  }
  0x17   : > { %s709_s27 = sshll.u32 %s163_s26, 3  ;;  %v264_v13 = vand.u32 4294901760, %v263_v10  ;;  %s812_s25 = sshll.u32 %s874_s16, 4  ;;  %s813_s25 = int_to_ptr.vmem [resolvable:$false] %s812_s25 }
  0x18   : > { %s165_s30 = scalar_lea.vmem %s1007_s0, %s709_s27  ;;  %p811_p13 = pneg %p810_p12 }
  0x19   : > { %v166_v5 = vld [vmem:[%s165_s30] sm:$0xff]  ;;  %s814_s26 = scalar_lea.vmem %s813_s25, 256  ;;  %p815_p0 = scmp.lt.s32.totalorder %s967_s10, %s813_s25 }
  0x1a   : > { %v177_v6 = vsel %vm175_vm2, %v166_v5, 0  ;;  %p816_p1 = scmp.lt.s32.totalorder %s814_s26, %s808_s24 }
  0x1b   : > { %v249_v8 = vand.u32 4294901760, %v177_v6 }
  0x1c   : > { %p817_p2 = por %p816_p1, %p815_p0 }
  0x1d   : > { %v250_v9 = vsub.f32 %v177_v6, %v249_v8 }
  0x1e   : > { %p818_p3 = pnand %p817_p2, %p811_p13 }
  0x1f   : > { %v251_v11 = vand.u32 4294901760, %v250_v9 }
  0x21   : > { %745 = vmatmul.mubr.f32.vlgmr.msra.gmra.mrb[0].mxu0 %v251_v11  ;;  %v252_v12 = vsub.f32 %v250_v9, %v251_v11 }
  0x22   : > { %748 = vmatpush3.msra.mxu0 %v262_v7  ;;  %749 = vmatprep.mubr.msk.f32.mxu0 %vm873_vm1, %v872_v1 }
  0x23   : > { %v253_v14 = vand.u32 4294901760, %v252_v12  ;;  %752 = vmatprep.subr.mxu0 %v872_v1 }
  0x25   : > { %730 = vmatmul.mubr.f32.vlgmr.msra.gmra.mrb[0].mxu1 %v253_v14 }
  0x26   : > { %733 = vmatpush3.msra.mxu1 %v264_v13  ;;  %734 = vmatprep.mubr.msk.f32.mxu1 %vm873_vm1, %v872_v1 }
  0x27   : > { %737 = vmatprep.subr.mxu1 %v872_v1 }
  0x29   : > { %750 = vmatmul.mubr.f32.vlgmr.msra.gmra.mrb[0].mxu0 %v249_v8 }
  0x2a   : > { %753 = vmatpush3.msra.mxu0 %v184_v3  ;;  %754 = vmatprep.mubr.msk.f32.mxu0 %vm873_vm1, %v872_v1 }
  0x2d   : > { %735 = vmatmul.mubr.f32.vlgmr.msra.gmra.mrb[0].mxu1 %v249_v8 }
  0x2e   : > { %738 = vmatpush3.msra.mxu1 %v261_v4  ;;  %739 = vmatprep.mubr.msk.f32.mxu1 %vm873_vm1, %v872_v1 }
  0x31   : > { %755 = vmatmul.mubr.f32.vlgmr.msra.gmra.mrb[0].mxu0 %v249_v8 }
  0x35   : > { %740 = vmatmul.mubr.f32.vlgmr.msra.gmra.mrb[0].mxu1 %v250_v9 }
 0x104   : > { %v625_v15 = vpop.f32.mrb[0].mxu0 }
 0x105   : > { %v756_v16 = vpop.f32.mrb[1].mxu0 }
 0x108   : > { %v405_v18 = vpop.f32.mrb[0].mxu1 }
 0x109   : > { %v757_v19 = vadd.f32 %v710_v17, %v405_v18  ;;  %v741_v20 = vpop.f32.mrb[1].mxu1 }
 0x10b   : > { %v758_v21 = vadd.f32 %v757_v19, %v625_v15 }
 0x10d   : > { %630 = vst.msk [vmem:[%s161_s9] sm:$0xff] %vm629_vm3, %v758_v21 }
 0x10e   : > { %821 = shalt.err (!%p818_p3)
}
 0x10f   : > { %s822_s27 = scalar_lea.hbm %s965_s19, 128  ;;  %s826_s30 = scalar_lea.hbm %s1010_s3, 512 }
 0x110   : > { %p823_p4 = scmp.ne.s32.totalorder %s965_s19, %s822_s27  ;;  %p827_p9 = scmp.lt.u32.totalorder %s965_s19, %s1010_s3 }
 0x111   : > { %p828_p10 = scmp.lt.u32.totalorder %s826_s30, %s822_s27  ;;  %p830_p12 = scmp.lt.u32.totalorder %s822_s27, %s965_s19 }
 0x112   : > { %p824_p7 = pnand %p823_p4, %p933_p5 }
 0x113   : > { %p829_p11 = por %p828_p10, %p827_p9 }
 0x114   : > { %p825_p8 = pneg %p824_p7 }
 0x115   : > { %p831_p13 = por %p830_p12, %p829_p11 }
 0x117   : > { %p832_p0 = pnand %p831_p13, %p825_p8 }
 0x119   : > { %835 = shalt.err (!%p832_p0)
}
 0x11a   : > { %767 = dma.vmem_to_hbm [thread:$0]  (%p933_p5), %s967_s10, 128, %s965_s19, %s632_s20  }
 0x11b PF: > { %p773_p1 = scmp.ge.s32.totalorder %s870_s15, 2  ;;  %s657_s6 = sand.u32 1, %s858_s12  }
 0x11c   : > { %s658_s7 = scalar_lea.sflag [#allocation3], %s657_s6 }
 0x11d   : > { %p770_p2 = pnand %p773_p1, %p937_p6 }
 0x11f   : > { %853 = dma.done.wait (!%p770_p2), %s658_s7, 128  }
 0x120   : > { %855 = vsyncadd (!%p770_p2), %s658_s7, 4294967168  ;;  %p13_p3 = scmp.ge.s32.totalorder %s920_s18, 6   ;;  %s1013_s12 = smov %s862_s13 }
 0x121   : > { %s1014_s13 = smov %s866_s14  ;;  %s1015_s14 = smov %s931_s21 }
 0x122   : > { %s1016_s15 = smov %s920_s18  ;;  %15 = sbr.rel (!%p13_p3) target bundleno = 3 (0x3), region = 67 }
 0x129   :  { %663 = vsyncpa [#allocation3], 1 }
 0x12a   :  { %665 = vsyncpa [#allocation3 + $0x1], 1 }

</bundles_post_ra>
